<compile_context>
chip_gen: v6e
topology: v6e:2x2x1
jax: 0.10.0
libtpu: 0.0.40
codegen_flags: <defaults>
</compile_context>

<pallas_src>
import functools

import jax
import jax.numpy as jnp
from jax.experimental import pallas as pl
from jax.experimental.pallas import tpu as pltpu

# Logical layer sizes of the PyTorch module.
IN_F, H1, H2, H3, OUT_F = 24, 400, 300, 300, 4
# Lane-padded sizes (multiples of 128).
IN_P, H1_P, H2_P, H3_P, OUT_P = 128, 512, 384, 384, 128


def policy_net_kernel(x_ref,
                      w1_ref, b1_ref,
                      w2_ref, b2_ref,
                      w3_ref, b3_ref,
                      w4_ref, b4_ref,
                      o_ref):
    # fc1 + relu   (bf16 operands -> f32 MXU accumulation; elementwise in f32)
    h = jnp.dot(x_ref[...], w1_ref[...], preferred_element_type=jnp.float32)
    h = jnp.maximum(h + b1_ref[...], 0.0)
    # fc2 + relu
    h = jnp.dot(h.astype(jnp.bfloat16), w2_ref[...],
                preferred_element_type=jnp.float32)
    h = jnp.maximum(h + b2_ref[...], 0.0)
    # fc3 + relu
    h = jnp.dot(h.astype(jnp.bfloat16), w3_ref[...],
                preferred_element_type=jnp.float32)
    h = jnp.maximum(h + b3_ref[...], 0.0)
    # fc4 + tanh   (action_mean)
    h = jnp.dot(h.astype(jnp.bfloat16), w4_ref[...],
                preferred_element_type=jnp.float32)
    o_ref[...] = jnp.tanh(h + b4_ref[...])


def _round_up(n, m):
    return ((n + m - 1) // m) * m


@functools.partial(jax.jit, static_argnames=("block_b",))
def policy_network_forward(x, params, block_b=256):
    """x: (B, 24) float32 -> (B, 4) float32 action means."""
    (w1, b1), (w2, b2), (w3, b3), (w4, b4) = params
    B = x.shape[0]

    # Batch tile: sublane-aligned (multiple of 8); never larger than needed
    # for tiny batches, capped at block_b for big ones.
    tb = min(block_b, _round_up(B, 8))
    b_pad = _round_up(B, tb)

    # Pad batch + feature dims and cast activations to bf16 (weights are bf16).
    xp = jnp.zeros((b_pad, IN_P), jnp.bfloat16)
    xp = xp.at[:B, :IN_F].set(x.astype(jnp.bfloat16))

    grid = (b_pad // tb,)

    def batch_map(i):
        return (i, 0)

    def resident_map(i):          # weights/biases: same block every iteration
        return (0, 0)

    def w_spec(shape):
        return pl.BlockSpec(shape, resident_map)

    out_padded = pl.pallas_call(
        policy_net_kernel,
        out_shape=jax.ShapeDtypeStruct((b_pad, OUT_P), jnp.float32),
        grid=grid,
        in_specs=[
            pl.BlockSpec((tb, IN_P), batch_map),
            w_spec((IN_P, H1_P)), w_spec((1, H1_P)),
            w_spec((H1_P, H2_P)), w_spec((1, H2_P)),
            w_spec((H2_P, H3_P)), w_spec((1, H3_P)),
            w_spec((H3_P, OUT_P)), w_spec((1, OUT_P)),
        ],
        out_specs=pl.BlockSpec((tb, OUT_P), batch_map),
        compiler_params=pltpu.CompilerParams(
            dimension_semantics=("parallel",)),
    )(xp, w1, b1, w2, b2, w3, b3, w4, b4)

    return out_padded[:B, :OUT_F]


def init_linear(key, fan_in, fan_out):
    """torch.nn.Linear default init: U(-1/sqrt(fan_in), 1/sqrt(fan_in)); f32 masters."""
    kw, kb = jax.random.split(key)
    bound = 1.0 / jnp.sqrt(jnp.float32(fan_in))
    # Stored as (in, out) so the kernel computes x @ W + b (== torch x @ W.T + b).
    w = jax.random.uniform(kw, (fan_in, fan_out), jnp.float32, -bound, bound)
    b = jax.random.uniform(kb, (fan_out,), jnp.float32, -bound, bound)
    return w, b


def pack_params(params_f32):
    """Zero-pad to lane-multiple shapes; weights -> bf16, biases stay f32 (1, out)."""
    padded_dims = [(IN_P, H1_P), (H1_P, H2_P), (H2_P, H3_P), (H3_P, OUT_P)]
    packed = []
    for (w, b), (ip, op) in zip(params_f32, padded_dims):
        wp = jnp.zeros((ip, op), jnp.float32).at[:w.shape[0], :w.shape[1]].set(w)
        bp = jnp.zeros((1, op), jnp.float32).at[0, :b.shape[0]].set(b)
        packed.append((wp.astype(jnp.bfloat16), bp))
    return tuple(packed)


def reference_forward(x, params_f32):
    """Pure-JAX reference mimicking the kernel's bf16-operand / f32-accum math."""
    (w1, b1), (w2, b2), (w3, b3), (w4, b4) = params_f32

    def layer(h, w, b, act):
        y = jnp.dot(h.astype(jnp.bfloat16), w.astype(jnp.bfloat16),
                    preferred_element_type=jnp.float32) + b
        return act(y)

    relu = lambda v: jnp.maximum(v, 0.0)
    h = layer(x, w1, b1, relu)
    h = layer(h, w2, b2, relu)
    h = layer(h, w3, b3, relu)
    return layer(h, w4, b4, jnp.tanh)


if __name__ == "__main__":
    key = jax.random.PRNGKey(0)
    k_x, k1, k2, k3, k4 = jax.random.split(key, 5)

    B = 8  # small batch; real workloads should stack many env steps into B
    x = jax.random.normal(k_x, (B, IN_F), jnp.float32)

    params_f32 = (
        init_linear(k1, IN_F, H1),
        init_linear(k2, H1, H2),
        init_linear(k3, H2, H3),
        init_linear(k4, H3, OUT_F),
    )
    params_kernel = pack_params(params_f32)

    out = policy_network_forward(x, params_kernel)
    out = jax.block_until_ready(out)

    ref = reference_forward(x, params_f32)
    assert out.shape == (B, OUT_F), out.shape
    max_err = float(jnp.max(jnp.abs(out - ref)))
    assert jnp.allclose(out, ref, atol=1e-3, rtol=1e-3), max_err

    print("KERNEL_OK")
</pallas_src>

<mosaic_0001>
module attributes {stable_mosaic.version = 11 : i64} {
  func.func @policy_net_kernel(%arg0: i32, %arg1: memref<8x128xbf16, #tpu.memory_space<vmem>>, %arg2: memref<128x512xbf16, #tpu.memory_space<vmem>>, %arg3: memref<1x512xf32, #tpu.memory_space<vmem>>, %arg4: memref<512x384xbf16, #tpu.memory_space<vmem>>, %arg5: memref<1x384xf32, #tpu.memory_space<vmem>>, %arg6: memref<384x384xbf16, #tpu.memory_space<vmem>>, %arg7: memref<1x384xf32, #tpu.memory_space<vmem>>, %arg8: memref<384x128xbf16, #tpu.memory_space<vmem>>, %arg9: memref<1x128xf32, #tpu.memory_space<vmem>>, %arg10: memref<8x128xf32, #tpu.memory_space<vmem>>) attributes {dimension_semantics = [#tpu.dimension_semantics<parallel>], iteration_bounds = array<i64: 1>, scalar_prefetch = 0 : i64, scratch_operands = 0 : i64, tpu.core_type = #tpu.core_type<tc>, window_params = [{transform_indices = @transform_0, window_bounds = array<i64: 8, 128>}, {pipeline_mode = #tpu.pipeline_mode<synchronous>, transform_indices = @transform_1, window_bounds = array<i64: 128, 512>}, {pipeline_mode = #tpu.pipeline_mode<synchronous>, transform_indices = @transform_2, window_bounds = array<i64: 1, 512>}, {pipeline_mode = #tpu.pipeline_mode<synchronous>, transform_indices = @transform_3, window_bounds = array<i64: 512, 384>}, {pipeline_mode = #tpu.pipeline_mode<synchronous>, transform_indices = @transform_4, window_bounds = array<i64: 1, 384>}, {pipeline_mode = #tpu.pipeline_mode<synchronous>, transform_indices = @transform_5, window_bounds = array<i64: 384, 384>}, {pipeline_mode = #tpu.pipeline_mode<synchronous>, transform_indices = @transform_6, window_bounds = array<i64: 1, 384>}, {pipeline_mode = #tpu.pipeline_mode<synchronous>, transform_indices = @transform_7, window_bounds = array<i64: 384, 128>}, {pipeline_mode = #tpu.pipeline_mode<synchronous>, transform_indices = @transform_8, window_bounds = array<i64: 1, 128>}, {transform_indices = @transform_9, window_bounds = array<i64: 8, 128>}]} {
    %c0 = arith.constant 0 : index
    %c0_0 = arith.constant 0 : index
    %0 = vector.load %arg1[%c0, %c0_0] : memref<8x128xbf16, #tpu.memory_space<vmem>>, vector<8x128xbf16>
    %c0_1 = arith.constant 0 : index
    %c0_2 = arith.constant 0 : index
    %1 = vector.load %arg2[%c0_1, %c0_2] : memref<128x512xbf16, #tpu.memory_space<vmem>>, vector<128x512xbf16>
    %cst = arith.constant dense<0.000000e+00> : vector<8x512xf32>
    %2 = tpu.matmul %0, %1, %cst {dimension_numbers = #tpu.dot_dimension_numbers<[1], [0], [0], [1], [0, 0, 1, 1], [], []>} : vector<8x128xbf16>, vector<128x512xbf16>, vector<8x512xf32> -> vector<8x512xf32>
    %c0_3 = arith.constant 0 : index
    %c0_4 = arith.constant 0 : index
    %3 = vector.load %arg3[%c0_3, %c0_4] : memref<1x512xf32, #tpu.memory_space<vmem>>, vector<1x512xf32>
    %4 = vector.broadcast %3 : vector<1x512xf32> to vector<8x512xf32>
    %5 = arith.addf %2, %4 : vector<8x512xf32>
    %cst_5 = arith.constant 0.000000e+00 : f32
    %6 = vector.broadcast %cst_5 : f32 to vector<8x512xf32>
    %7 = arith.maximumf %5, %6 : vector<8x512xf32>
    %8 = arith.truncf %7 : vector<8x512xf32> to vector<8x512xbf16>
    %c0_6 = arith.constant 0 : index
    %c0_7 = arith.constant 0 : index
    %9 = vector.load %arg4[%c0_6, %c0_7] : memref<512x384xbf16, #tpu.memory_space<vmem>>, vector<512x384xbf16>
    %cst_8 = arith.constant dense<0.000000e+00> : vector<8x384xf32>
    %10 = tpu.matmul %8, %9, %cst_8 {dimension_numbers = #tpu.dot_dimension_numbers<[1], [0], [0], [1], [0, 0, 1, 1], [], []>} : vector<8x512xbf16>, vector<512x384xbf16>, vector<8x384xf32> -> vector<8x384xf32>
    %c0_9 = arith.constant 0 : index
    %c0_10 = arith.constant 0 : index
    %11 = vector.load %arg5[%c0_9, %c0_10] : memref<1x384xf32, #tpu.memory_space<vmem>>, vector<1x384xf32>
    %12 = vector.broadcast %11 : vector<1x384xf32> to vector<8x384xf32>
    %13 = arith.addf %10, %12 : vector<8x384xf32>
    %cst_11 = arith.constant 0.000000e+00 : f32
    %14 = vector.broadcast %cst_11 : f32 to vector<8x384xf32>
    %15 = arith.maximumf %13, %14 : vector<8x384xf32>
    %16 = arith.truncf %15 : vector<8x384xf32> to vector<8x384xbf16>
    %c0_12 = arith.constant 0 : index
    %c0_13 = arith.constant 0 : index
    %17 = vector.load %arg6[%c0_12, %c0_13] : memref<384x384xbf16, #tpu.memory_space<vmem>>, vector<384x384xbf16>
    %cst_14 = arith.constant dense<0.000000e+00> : vector<8x384xf32>
    %18 = tpu.matmul %16, %17, %cst_14 {dimension_numbers = #tpu.dot_dimension_numbers<[1], [0], [0], [1], [0, 0, 1, 1], [], []>} : vector<8x384xbf16>, vector<384x384xbf16>, vector<8x384xf32> -> vector<8x384xf32>
    %c0_15 = arith.constant 0 : index
    %c0_16 = arith.constant 0 : index
    %19 = vector.load %arg7[%c0_15, %c0_16] : memref<1x384xf32, #tpu.memory_space<vmem>>, vector<1x384xf32>
    %20 = vector.broadcast %19 : vector<1x384xf32> to vector<8x384xf32>
    %21 = arith.addf %18, %20 : vector<8x384xf32>
    %cst_17 = arith.constant 0.000000e+00 : f32
    %22 = vector.broadcast %cst_17 : f32 to vector<8x384xf32>
    %23 = arith.maximumf %21, %22 : vector<8x384xf32>
    %24 = arith.truncf %23 : vector<8x384xf32> to vector<8x384xbf16>
    %c0_18 = arith.constant 0 : index
    %c0_19 = arith.constant 0 : index
    %25 = vector.load %arg8[%c0_18, %c0_19] : memref<384x128xbf16, #tpu.memory_space<vmem>>, vector<384x128xbf16>
    %cst_20 = arith.constant dense<0.000000e+00> : vector<8x128xf32>
    %26 = tpu.matmul %24, %25, %cst_20 {dimension_numbers = #tpu.dot_dimension_numbers<[1], [0], [0], [1], [0, 0, 1, 1], [], []>} : vector<8x384xbf16>, vector<384x128xbf16>, vector<8x128xf32> -> vector<8x128xf32>
    %c0_21 = arith.constant 0 : index
    %c0_22 = arith.constant 0 : index
    %27 = vector.load %arg9[%c0_21, %c0_22] : memref<1x128xf32, #tpu.memory_space<vmem>>, vector<1x128xf32>
    %28 = vector.broadcast %27 : vector<1x128xf32> to vector<8x128xf32>
    %29 = arith.addf %26, %28 : vector<8x128xf32>
    %30 = math.tanh %29 : vector<8x128xf32>
    %c0_23 = arith.constant 0 : index
    %c0_24 = arith.constant 0 : index
    %31 = vector.load %arg10[%c0_23, %c0_24] : memref<8x128xf32, #tpu.memory_space<vmem>>, vector<8x128xf32>
    tpu.vector_store %arg10[%c0_23, %c0_24], %30 {strides = array<i32>} : memref<8x128xf32, #tpu.memory_space<vmem>>, vector<8x128xf32>,
    return
  }
  func.func @transform_0(%arg0: i32) -> (i32, i32) {
    %c0_i32 = arith.constant 0 : i32
    %c0_i32_0 = arith.constant 0 : i32
    return %arg0, %c0_i32 : i32, i32
  }
  func.func @transform_1(%arg0: i32) -> (i32, i32) {
    %c0_i32 = arith.constant 0 : i32
    %c0_i32_0 = arith.constant 0 : i32
    %c0_i32_1 = arith.constant 0 : i32
    return %c0_i32, %c0_i32_0 : i32, i32
  }
  func.func @transform_2(%arg0: i32) -> (i32, i32) {
    %c0_i32 = arith.constant 0 : i32
    %c0_i32_0 = arith.constant 0 : i32
    %c0_i32_1 = arith.constant 0 : i32
    return %c0_i32, %c0_i32_0 : i32, i32
  }
  func.func @transform_3(%arg0: i32) -> (i32, i32) {
    %c0_i32 = arith.constant 0 : i32
    %c0_i32_0 = arith.constant 0 : i32
    %c0_i32_1 = arith.constant 0 : i32
    return %c0_i32, %c0_i32_0 : i32, i32
  }
  func.func @transform_4(%arg0: i32) -> (i32, i32) {
    %c0_i32 = arith.constant 0 : i32
    %c0_i32_0 = arith.constant 0 : i32
    %c0_i32_1 = arith.constant 0 : i32
    return %c0_i32, %c0_i32_0 : i32, i32
  }
  func.func @transform_5(%arg0: i32) -> (i32, i32) {
    %c0_i32 = arith.constant 0 : i32
    %c0_i32_0 = arith.constant 0 : i32
    %c0_i32_1 = arith.constant 0 : i32
    return %c0_i32, %c0_i32_0 : i32, i32
  }
  func.func @transform_6(%arg0: i32) -> (i32, i32) {
    %c0_i32 = arith.constant 0 : i32
    %c0_i32_0 = arith.constant 0 : i32
    %c0_i32_1 = arith.constant 0 : i32
    return %c0_i32, %c0_i32_0 : i32, i32
  }
  func.func @transform_7(%arg0: i32) -> (i32, i32) {
    %c0_i32 = arith.constant 0 : i32
    %c0_i32_0 = arith.constant 0 : i32
    %c0_i32_1 = arith.constant 0 : i32
    return %c0_i32, %c0_i32_0 : i32, i32
  }
  func.func @transform_8(%arg0: i32) -> (i32, i32) {
    %c0_i32 = arith.constant 0 : i32
    %c0_i32_0 = arith.constant 0 : i32
    %c0_i32_1 = arith.constant 0 : i32
    return %c0_i32, %c0_i32_0 : i32, i32
  }
  func.func @transform_9(%arg0: i32) -> (i32, i32) {
    %c0_i32 = arith.constant 0 : i32
    %c0_i32_0 = arith.constant 0 : i32
    return %arg0, %c0_i32 : i32, i32
  }
}

</mosaic_0001>

<bundles_post_ra>
// kernel: policy_network_forward.1
= control target key start
LH: loop header
LB: loop body
LE: loop exit
PB: predicated region body
PF: predicated region fallthrough
CT: control target
= control target key end

     0   :  { %14 = vsyncpa [#allocation3], 0  ;;  %s3088_s0 = inlined_call_operand.vmem [shape: bf16[8,128], index: 0, kind: input, shape index: {}]   ;;  %s3089_s1 = inlined_call_operand.hbm [shape: bf16[128,512], index: 1, kind: input, shape index: {}]   ;;  %s3090_s2 = inlined_call_operand.vmem [shape: f32[1,512], index: 2, kind: input, shape index: {}]   ;;  %s3091_s3 = inlined_call_operand.hbm [shape: bf16[512,384], index: 3, kind: input, shape index: {}]   ;;  %s3092_s4 = inlined_call_operand.vmem [shape: f32[1,384], index: 4, kind: input, shape index: {}]   ;;  %s3093_s5 = inlined_call_operand.hbm [shape: bf16[384,384], index: 5, kind: input, shape index: {}]   ;;  %s3094_s6 = inlined_call_operand.vmem [shape: f32[1,384], index: 6, kind: input, shape index: {}]   ;;  %s3095_s7 = inlined_call_operand.hbm [shape: bf16[384,128], index: 7, kind: input, shape index: {}]   ;;  %s3096_s8 = inlined_call_operand.vmem [shape: f32[1,128], index: 8, kind: input, shape index: {}]   ;;  %s3097_s9 = inlined_call_operand.vmem [shape: f32[8,128], index: 9, kind: output, shape index: {}]  }
   0x1   :  { %15 = vsyncpa [#allocation5], 0 }
   0x2   :  { %16 = vsyncpa [#allocation8], 0  ;;  %s2939_s30 = smov [#allocation4]  }
   0x3   :  { %s38_s10 = sshll.u32 %s2939_s30, 4  ;;  %s39_s10 = int_to_ptr.vmem [resolvable:$true] %s38_s10 }
   0x4   :  { %s2861_s11 = scalar_lea.vmem %s39_s10, 12288  ;;  %p2866_p1 = scmp.lt.s32.totalorder %s39_s10, %s39_s10 }
   0x5   :  { %p2862_p0 = scmp.ne.s32.totalorder %s39_s10, %s2861_s11  ;;  %p2867_p2 = scmp.lt.s32.totalorder %s2861_s11, %s2861_s11 }
   0x7   :  { %p2868_p3 = por %p2867_p2, %p2866_p1 }
   0x9   :  { %p2869_p4 = pnand %p2868_p3, %p2862_p0 }
   0xb   :  { %2872 = shalt.err (!%p2869_p4)
}
   0xc   :  { %s2940_s12 = smov 192   ;;  %s2941_s13 = smov 12  }
   0xd   :  { %44 = dma.hbm_to_vmem [thread:$0]  %s3091_s3, 12288, %s39_s10, [#allocation5], %s2940_s12, %s2940_s12, %s2941_s13  }
   0xe   :  { %s2942_s16 = smov [#allocation2]  }
   0xf   :  { %s24_s17 = sshll.u32 %s2942_s16, 4  ;;  %s25_s17 = int_to_ptr.vmem [resolvable:$true] %s24_s17 }
  0x10   :  { %s2881_s18 = scalar_lea.vmem %s25_s17, 4096  ;;  %p2886_p6 = scmp.lt.s32.totalorder %s25_s17, %s25_s17 }
  0x11   :  { %p2882_p5 = scmp.ne.s32.totalorder %s25_s17, %s2881_s18  ;;  %p2887_p7 = scmp.lt.s32.totalorder %s2881_s18, %s2881_s18 }
  0x13   :  { %p2888_p8 = por %p2887_p7, %p2886_p6 }
  0x15   :  { %p2889_p9 = pnand %p2888_p8, %p2882_p5 }
  0x17   :  { %2892 = shalt.err (!%p2889_p9)
}
  0x18   :  { %s2943_s19 = smov 256   ;;  %s2944_s20 = smov 16  }
  0x19   :  { %30 = dma.hbm_to_vmem [thread:$0]  %s3089_s1, 4096, %s25_s17, [#allocation3], %s2943_s19, %s2943_s19, %s2944_s20  }
  0x1a   :  { %s2945_s23 = smov [#allocation6]   ;;  %s2946_s25 = smov [#allocation7]  }
  0x1b   :  { %s52_s24 = sshll.u32 %s2945_s23, 4  ;;  %s66_s3 = sshll.u32 %s2946_s25, 4  ;;  %s53_s24 = int_to_ptr.vmem [resolvable:$true] %s52_s24  ;;  %s67_s3 = int_to_ptr.vmem [resolvable:$true] %s66_s3 }
  0x1c   :  { %s2901_s26 = scalar_lea.vmem %s53_s24, 9216  ;;  %p2906_p11 = scmp.lt.s32.totalorder %s53_s24, %s53_s24 }
  0x1d   :  { %p2902_p10 = scmp.ne.s32.totalorder %s53_s24, %s2901_s26  ;;  %p2907_p12 = scmp.lt.s32.totalorder %s2901_s26, %s2901_s26 }
  0x1f   :  { %p2908_p13 = por %p2907_p12, %p2906_p11 }
  0x21   :  { %p2909_p0 = pnand %p2908_p13, %p2902_p10 }
  0x23   :  { %2912 = shalt.err (!%p2909_p0)
}
  0x24   :  { %58 = dma.hbm_to_vmem [thread:$0]  %s3093_s5, 9216, %s53_s24, [#allocation5], %s2940_s12, %s2940_s12, %s2941_s13  }
  0x25   :  { %s2921_s1 = scalar_lea.vmem %s67_s3, 3072  ;;  %p2926_p2 = scmp.lt.s32.totalorder %s67_s3, %s67_s3 }
  0x26   :  { %p2922_p1 = scmp.ne.s32.totalorder %s67_s3, %s2921_s1  ;;  %p2927_p3 = scmp.lt.s32.totalorder %s2921_s1, %s2921_s1 }
  0x28   :  { %p2928_p4 = por %p2927_p3, %p2926_p2 }
  0x2a   :  { %p2929_p5 = pnand %p2928_p4, %p2922_p1 }
  0x2c   :  { %2932 = shalt.err (!%p2929_p5)
}
  0x2d   :  { %s2947_s29 = smov 64   ;;  %s2948_s30 = smov 4  }
  0x2e   :  { %72 = dma.hbm_to_vmem [thread:$0]  %s3095_s7, 3072, %s67_s3, [#allocation8], %s2947_s29, %s2947_s29, %s2948_s30  }
  0x2f   :  { %2933 = dma.done.wait [#allocation3], 4096  }
  0x30   :  { %2934 = vsyncadd [#allocation3], 4294963200 }
  0x31   :  { %2935 = dma.done.wait [#allocation5], 21504  }
  0x32   :  { %2936 = vsyncadd [#allocation5], 4294945792 }
  0x33   :  { %2937 = dma.done.wait [#allocation8], 3072  }
  0x34   :  { %2938 = vsyncadd [#allocation8], 4294964224  ;;  %v2949_v0 = vmov 0   ;;  %v2555_v1 = vld [vmem:[#allocation2 + $0xe4] ss:$16 sps:$4 sm:$0xff]   ;;  %vm2951_vm0 = vmmov 0  }
  0x35   :  { %335 = vmatprep.mubr.bf16.mxu0 %v2949_v0  ;;  %376 = vmatprep.mubr.bf16.mxu1 %v2949_v0  ;;  %v2557_v2 = vld [vmem:[#allocation2 + $0xec] ss:$16 sps:$4 sm:$0xff]   ;;  %v2559_v3 = vld [vmem:[#allocation2 + $0xe0] ss:$16 sps:$4 sm:$0xff]   ;;  %v2560_v4 = vld [vmem:[#allocation2 + $0xe8] ss:$16 sps:$4 sm:$0xff]  }
  0x36   :  { %303 = vmatprep.subr.bf16.mxu0 %v2555_v1  ;;  %344 = vmatprep.subr.bf16.mxu1 %v2557_v2  ;;  %v2561_v5 = vld [vmem:[#allocation2 + $0xc4] ss:$16 sps:$4 sm:$0xff]   ;;  %v2563_v6 = vld [vmem:[#allocation2 + $0xcc] ss:$16 sps:$4 sm:$0xff]   ;;  %v2565_v7 = vld [vmem:[#allocation2 + $0xc0] ss:$16 sps:$4 sm:$0xff]  }
  0x37   :  { %304 = vmatpush1.bf16.msra.mxu0 %v2559_v3  ;;  %345 = vmatpush1.bf16.msra.mxu1 %v2560_v4  ;;  %v2566_v8 = vld [vmem:[#allocation2 + $0xc8] ss:$16 sps:$4 sm:$0xff]   ;;  %v2567_v9 = vld [vmem:[#allocation2 + $0xa4] ss:$16 sps:$4 sm:$0xff]   ;;  %v2569_v10 = vld [vmem:[#allocation2 + $0xac] ss:$16 sps:$4 sm:$0xff]  }
  0x38   :  { %305 = vmatprep.subr.bf16.mxu0 %v2561_v5  ;;  %346 = vmatprep.subr.bf16.mxu1 %v2563_v6  ;;  %v2571_v11 = vld [vmem:[#allocation2 + $0xa0] ss:$16 sps:$4 sm:$0xff]   ;;  %v2572_v12 = vld [vmem:[#allocation2 + $0xa8] ss:$16 sps:$4 sm:$0xff]   ;;  %v2573_v13 = vld [vmem:[#allocation2 + $0x84] ss:$16 sps:$4 sm:$0xff]  }
  0x39   :  { %v2575_v14 = vld [vmem:[#allocation2 + $0x8c] ss:$16 sps:$4 sm:$0xff]   ;;  %v2577_v15 = vld [vmem:[#allocation2 + $0x80] ss:$16 sps:$4 sm:$0xff]   ;;  %v2578_v16 = vld [vmem:[#allocation2 + $0x88] ss:$16 sps:$4 sm:$0xff]  }
  0x3a   :  { %v2579_v17 = vld [vmem:[#allocation2 + $0x64] ss:$16 sps:$4 sm:$0xff]   ;;  %v2581_v18 = vld [vmem:[#allocation2 + $0x6c] ss:$16 sps:$4 sm:$0xff]   ;;  %v2583_v19 = vld [vmem:[#allocation2 + $0x60] ss:$16 sps:$4 sm:$0xff]  }
  0x3b   :  { %306 = vmatpush1.bf16.msra.mxu0 %v2565_v7  ;;  %347 = vmatpush1.bf16.msra.mxu1 %v2566_v8  ;;  %v2584_v20 = vld [vmem:[#allocation2 + $0x68] ss:$16 sps:$4 sm:$0xff]   ;;  %v2585_v21 = vld [vmem:[#allocation2 + $0x44] ss:$16 sps:$4 sm:$0xff]   ;;  %v2587_v22 = vld [vmem:[#allocation2 + $0x4c] ss:$16 sps:$4 sm:$0xff]  }
  0x3c   :  { %307 = vmatprep.subr.bf16.mxu0 %v2567_v9  ;;  %348 = vmatprep.subr.bf16.mxu1 %v2569_v10  ;;  %v2589_v23 = vld [vmem:[#allocation2 + $0x40] ss:$16 sps:$4 sm:$0xff]   ;;  %v2590_v24 = vld [vmem:[#allocation2 + $0x48] ss:$16 sps:$4 sm:$0xff]   ;;  %v2591_v25 = vld [vmem:[#allocation2 + $0x24] ss:$16 sps:$4 sm:$0xff]  }
  0x3d   :  { %v2593_v26 = vld [vmem:[#allocation2 + $0x2c] ss:$16 sps:$4 sm:$0xff]   ;;  %v2595_v27 = vld [vmem:[#allocation2 + $0x20] ss:$16 sps:$4 sm:$0xff]   ;;  %v2596_v28 = vld [vmem:[#allocation2 + $0x28] ss:$16 sps:$4 sm:$0xff]  }
  0x3e   :  { %v2597_v29 = vld [vmem:[#allocation2 + $0x4] ss:$16 sps:$4 sm:$0xff]   ;;  %v2599_v30 = vld [vmem:[#allocation2 + $0xc] ss:$16 sps:$4 sm:$0xff]   ;;  %v2601_v31 = vld [vmem:[#allocation2] ss:$16 sps:$4 sm:$0xff]  }
  0x3f   :  { %308 = vmatpush1.bf16.msra.mxu0 %v2571_v11  ;;  %349 = vmatpush1.bf16.msra.mxu1 %v2572_v12  ;;  %v2602_v32 = vld [vmem:[#allocation2 + $0x8] ss:$16 sps:$4 sm:$0xff]   ;;  %v88_v35 = vld [vmem:[%s3088_s0] sm:$0xf]  ;;  %v2609_v40 = vld [vmem:[#allocation4 + $0x90] ss:$12 sps:$4 sm:$0xff]  }
  0x40   :  { %309 = vmatprep.subr.bf16.mxu0 %v2573_v13  ;;  %350 = vmatprep.subr.bf16.mxu1 %v2575_v14  ;;  %v2605_v33 = vld [vmem:[#allocation4 + $0xac] ss:$12 sps:$4 sm:$0xff]   ;;  %v2603_v36 = vld [vmem:[#allocation4 + $0xa8] ss:$12 sps:$4 sm:$0xff]   ;;  %v2612_v41 = vld [vmem:[#allocation4 + $0x210] ss:$12 sps:$4 sm:$0xff]  }
  0x41   :  { %v2608_v34 = vld [vmem:[#allocation4 + $0x22c] ss:$12 sps:$4 sm:$0xff]   ;;  %v2606_v37 = vld [vmem:[#allocation4 + $0x228] ss:$12 sps:$4 sm:$0xff]   ;;  %v2623_v46 = vld [vmem:[#allocation4 + $0x64] ss:$12 sps:$4 sm:$0xff]  }
  0x42   :  { %v2611_v38 = vld [vmem:[#allocation4 + $0x94] ss:$12 sps:$4 sm:$0xff]   ;;  %v2617_v42 = vld [vmem:[#allocation4 + $0x7c] ss:$12 sps:$4 sm:$0xff]   ;;  %v2615_v44 = vld [vmem:[#allocation4 + $0x78] ss:$12 sps:$4 sm:$0xff]  }
  0x43   :  { %310 = vmatpush1.bf16.msra.mxu0 %v2577_v15  ;;  %351 = vmatpush1.bf16.msra.mxu1 %v2578_v16  ;;  %v2614_v39 = vld [vmem:[#allocation4 + $0x214] ss:$12 sps:$4 sm:$0xff]   ;;  %v2620_v43 = vld [vmem:[#allocation4 + $0x1fc] ss:$12 sps:$4 sm:$0xff]   ;;  %v2618_v45 = vld [vmem:[#allocation4 + $0x1f8] ss:$12 sps:$4 sm:$0xff]  }
  0x44   :  { %311 = vmatprep.subr.bf16.mxu0 %v2579_v17  ;;  %352 = vmatprep.subr.bf16.mxu1 %v2581_v18  ;;  %v2626_v47 = vld [vmem:[#allocation4 + $0x1e4] ss:$12 sps:$4 sm:$0xff]   ;;  %v2621_v48 = vld [vmem:[#allocation4 + $0x60] ss:$12 sps:$4 sm:$0xff]   ;;  %v2627_v52 = vld [vmem:[#allocation4 + $0x48] ss:$12 sps:$4 sm:$0xff]  }
  0x45   :  { %v2624_v49 = vld [vmem:[#allocation4 + $0x1e0] ss:$12 sps:$4 sm:$0xff]   ;;  %v2630_v53 = vld [vmem:[#allocation4 + $0x1c8] ss:$12 sps:$4 sm:$0xff]   ;;  %v2633_v56 = vld [vmem:[#allocation4 + $0x30] ss:$12 sps:$4 sm:$0xff]  }
  0x46   :  { %v2629_v50 = vld [vmem:[#allocation4 + $0x4c] ss:$12 sps:$4 sm:$0xff]   ;;  %v2635_v54 = vld [vmem:[#allocation4 + $0x34] ss:$12 sps:$4 sm:$0xff]   ;;  %v2636_v57 = vld [vmem:[#allocation4 + $0x1b0] ss:$12 sps:$4 sm:$0xff]  }
  0x47   :  { %312 = vmatpush1.bf16.msra.mxu0 %v2583_v19  ;;  %353 = vmatpush1.bf16.msra.mxu1 %v2584_v20  ;;  %v2632_v51 = vld [vmem:[#allocation4 + $0x1cc] ss:$12 sps:$4 sm:$0xff]   ;;  %v2638_v55 = vld [vmem:[#allocation4 + $0x1b4] ss:$12 sps:$4 sm:$0xff]   ;;  %v2641_v58 = vld [vmem:[#allocation4 + $0x1c] ss:$12 sps:$4 sm:$0xff]  }
  0x48   :  { %313 = vmatprep.subr.bf16.mxu0 %v2585_v21  ;;  %354 = vmatprep.subr.bf16.mxu1 %v2587_v22  ;;  %v2644_v59 = vld [vmem:[#allocation4 + $0x19c] ss:$12 sps:$4 sm:$0xff]   ;;  %v2639_v60 = vld [vmem:[#allocation4 + $0x18] ss:$12 sps:$4 sm:$0xff]   ;;  %v2645_v1 = vld [vmem:[#allocation4] ss:$12 sps:$4 sm:$0xff]  }
  0x49   :  { %v2642_v61 = vld [vmem:[#allocation4 + $0x198] ss:$12 sps:$4 sm:$0xff]   ;;  %v2648_v2 = vld [vmem:[#allocation4 + $0x180] ss:$12 sps:$4 sm:$0xff]   ;;  %v2651_v5 = vld [vmem:[#allocation4 + $0x168] ss:$12 sps:$4 sm:$0xff]  }
  0x4a   :  { %v2647_v62 = vld [vmem:[#allocation4 + $0x4] ss:$12 sps:$4 sm:$0xff]   ;;  %v2653_v3 = vld [vmem:[#allocation4 + $0x16c] ss:$12 sps:$4 sm:$0xff]   ;;  %v2654_v6 = vld [vmem:[#allocation4 + $0x2e8] ss:$12 sps:$4 sm:$0xff]  }
  0x4b   :  { %314 = vmatpush1.bf16.msra.mxu0 %v2589_v23  ;;  %355 = vmatpush1.bf16.msra.mxu1 %v2590_v24  ;;  %v2650_v63 = vld [vmem:[#allocation4 + $0x184] ss:$12 sps:$4 sm:$0xff]   ;;  %v2656_v4 = vld [vmem:[#allocation4 + $0x2ec] ss:$12 sps:$4 sm:$0xff]   ;;  %v2659_v7 = vld [vmem:[#allocation4 + $0x154] ss:$12 sps:$4 sm:$0xff]  }
  0x4c   :  { %315 = vmatprep.subr.bf16.mxu0 %v2591_v25  ;;  %356 = vmatprep.subr.bf16.mxu1 %v2593_v26  ;;  %v2662_v8 = vld [vmem:[#allocation4 + $0x2d4] ss:$12 sps:$4 sm:$0xff]   ;;  %v2657_v9 = vld [vmem:[#allocation4 + $0x150] ss:$12 sps:$4 sm:$0xff]   ;;  %v2663_v13 = vld [vmem:[#allocation4 + $0x138] ss:$12 sps:$4 sm:$0xff]  }
  0x4d   :  { %v2660_v10 = vld [vmem:[#allocation4 + $0x2d0] ss:$12 sps:$4 sm:$0xff]   ;;  %v2666_v14 = vld [vmem:[#allocation4 + $0x2b8] ss:$12 sps:$4 sm:$0xff]   ;;  %v2669_v17 = vld [vmem:[#allocation4 + $0x120] ss:$12 sps:$4 sm:$0xff]  }
  0x4e   :  { %v2665_v11 = vld [vmem:[#allocation4 + $0x13c] ss:$12 sps:$4 sm:$0xff]   ;;  %v2671_v15 = vld [vmem:[#allocation4 + $0x124] ss:$12 sps:$4 sm:$0xff]   ;;  %v2672_v18 = vld [vmem:[#allocation4 + $0x2a0] ss:$12 sps:$4 sm:$0xff]  }
  0x4f   :  { %316 = vmatpush1.bf16.msra.mxu0 %v2595_v27  ;;  %357 = vmatpush1.bf16.msra.mxu1 %v2596_v28  ;;  %v2668_v12 = vld [vmem:[#allocation4 + $0x2bc] ss:$12 sps:$4 sm:$0xff]   ;;  %v2674_v16 = vld [vmem:[#allocation4 + $0x2a4] ss:$12 sps:$4 sm:$0xff]   ;;  %v2677_v19 = vld [vmem:[#allocation4 + $0x10c] ss:$12 sps:$4 sm:$0xff]  }
  0x50   :  { %317 = vmatprep.subr.bf16.mxu0 %v2597_v29  ;;  %358 = vmatprep.subr.bf16.mxu1 %v2599_v30  ;;  %v2680_v20 = vld [vmem:[#allocation4 + $0x28c] ss:$12 sps:$4 sm:$0xff]   ;;  %v2675_v21 = vld [vmem:[#allocation4 + $0x108] ss:$12 sps:$4 sm:$0xff]   ;;  %v2681_v25 = vld [vmem:[#allocation4 + $0xf0] ss:$12 sps:$4 sm:$0xff]  }
  0x51   :  { %v2678_v22 = vld [vmem:[#allocation4 + $0x288] ss:$12 sps:$4 sm:$0xff]   ;;  %v2684_v26 = vld [vmem:[#allocation4 + $0x270] ss:$12 sps:$4 sm:$0xff]   ;;  %v2687_v29 = vld [vmem:[#allocation4 + $0xd8] ss:$12 sps:$4 sm:$0xff]  }
  0x52   :  { %v2683_v23 = vld [vmem:[#allocation4 + $0xf4] ss:$12 sps:$4 sm:$0xff]   ;;  %v2689_v27 = vld [vmem:[#allocation4 + $0xdc] ss:$12 sps:$4 sm:$0xff]   ;;  %v2690_v30 = vld [vmem:[#allocation4 + $0x258] ss:$12 sps:$4 sm:$0xff]  }
  0x53   :  { %318 = vmatpush1.bf16.msra.mxu0 %v2601_v31  ;;  %359 = vmatpush1.bf16.msra.mxu1 %v2602_v32  ;;  %v2686_v24 = vld [vmem:[#allocation4 + $0x274] ss:$12 sps:$4 sm:$0xff]   ;;  %v2692_v28 = vld [vmem:[#allocation4 + $0x25c] ss:$12 sps:$4 sm:$0xff]   ;;  %v2695_v31 = vld [vmem:[#allocation4 + $0xc4] ss:$12 sps:$4 sm:$0xff]  }
  0x54   :  { %1050 = vmatprep.subr.bf16.mxu0 %v2605_v33  ;;  %1091 = vmatprep.subr.bf16.mxu1 %v2608_v34  ;;  %v2698_v32 = vld [vmem:[#allocation4 + $0x244] ss:$12 sps:$4 sm:$0xff]   ;;  %v2693_v33 = vld [vmem:[#allocation4 + $0xc0] ss:$12 sps:$4 sm:$0xff]  }
  0x55   :  { %v2696_v34 = vld [vmem:[#allocation4 + $0x240] ss:$12 sps:$4 sm:$0xff]  }
  0x56   :  { %336 = vmatmul.mubr.bf16.vlgmr.msra.gmra.mxu0 %v88_v35  ;;  %377 = vmatmul.mubr.bf16.vlgmr.msra.gmra.mxu1 %v88_v35  ;;  %v2699_v35 = vld [vmem:[#allocation4 + $0x170] ss:$12 sps:$4 sm:$0xff]  }
  0x57   :  { %1051 = vmatpush1.bf16.msra.mxu0 %v2603_v36  ;;  %1092 = vmatpush1.bf16.msra.mxu1 %v2606_v37  ;;  %v2700_v36 = vld [vmem:[#allocation4 + $0x2f0] ss:$12 sps:$4 sm:$0xff]   ;;  %v123_v37 = vlaneseq }
  0x58   :  { %1052 = vmatprep.subr.bf16.mxu0 %v2611_v38  ;;  %1093 = vmatprep.subr.bf16.mxu1 %v2614_v39 }
  0x59   :  { %v124_v38 = vshrl.u32 %v123_v37, 7  ;;  %v2736_v37 = vld [vmem:[#allocation6 + $0x94] ss:$12 sps:$4 sm:$0xff]  }
  0x5b   :  { %1053 = vmatpush1.bf16.msra.mxu0 %v2609_v40  ;;  %1094 = vmatpush1.bf16.msra.mxu1 %v2612_v41  ;;  %v3025_v39 = vsub.s32 0, %v124_v38  ;;  %v3027_v40 = vsub.s32 2, %v124_v38  ;;  %v121_v41 = vld [vmem:[%s3090_s2] sm:$0xf] }
  0x5c   :  { %1054 = vmatprep.subr.bf16.mxu0 %v2617_v42  ;;  %1095 = vmatprep.subr.bf16.mxu1 %v2620_v43  ;;  %v3032_v42 = vsub.s32 1, %v124_v38  ;;  %v137_v43 = vsub.s32 3, %v124_v38  ;;  %v2734_v38 = vld [vmem:[#allocation6 + $0x90] ss:$12 sps:$4 sm:$0xff]  }
  0x5f   :  { %1055 = vmatpush1.bf16.msra.mxu0 %v2615_v44  ;;  %1096 = vmatpush1.bf16.msra.mxu1 %v2618_v45  ;;  %v126_v44 = vrot.slane %v121_v41, %v3025_v39  ;;  %v134_v45 = vrot.slane %v121_v41, %v3027_v40 }
  0x60   :  { %1056 = vmatprep.subr.bf16.mxu0 %v2623_v46  ;;  %1097 = vmatprep.subr.bf16.mxu1 %v2626_v47  ;;  %v130_v46 = vrot.slane %v121_v41, %v3032_v42  ;;  %v138_v47 = vrot.slane %v121_v41, %v137_v43  ;;  %v2739_v41 = vld [vmem:[#allocation6 + $0x7c] ss:$12 sps:$4 sm:$0xff]   ;;  %v2737_v43 = vld [vmem:[#allocation6 + $0x78] ss:$12 sps:$4 sm:$0xff]  }
  0x63   :  { %1057 = vmatpush1.bf16.msra.mxu0 %v2621_v48  ;;  %1098 = vmatpush1.bf16.msra.mxu1 %v2624_v49 }
  0x64   :  { %1058 = vmatprep.subr.bf16.mxu0 %v2629_v50  ;;  %1099 = vmatprep.subr.bf16.mxu1 %v2632_v51 }
  0x67   :  { %1059 = vmatpush1.bf16.msra.mxu0 %v2627_v52  ;;  %1100 = vmatpush1.bf16.msra.mxu1 %v2630_v53 }
  0x68   :  { %1060 = vmatprep.subr.bf16.mxu0 %v2635_v54  ;;  %1101 = vmatprep.subr.bf16.mxu1 %v2638_v55 }
  0x6b   :  { %1061 = vmatpush1.bf16.msra.mxu0 %v2633_v56  ;;  %1102 = vmatpush1.bf16.msra.mxu1 %v2636_v57 }
  0x6c   :  { %1062 = vmatprep.subr.bf16.mxu0 %v2641_v58  ;;  %1103 = vmatprep.subr.bf16.mxu1 %v2644_v59 }
  0x6f   :  { %1063 = vmatpush1.bf16.msra.mxu0 %v2639_v60  ;;  %1104 = vmatpush1.bf16.msra.mxu1 %v2642_v61 }
  0x70   :  { %1064 = vmatprep.subr.bf16.mxu0 %v2647_v62  ;;  %1105 = vmatprep.subr.bf16.mxu1 %v2650_v63 }
  0x73   :  { %1065 = vmatpush1.bf16.msra.mxu0 %v2645_v1  ;;  %1106 = vmatpush1.bf16.msra.mxu1 %v2648_v2 }
  0x74   :  { %1066 = vmatprep.subr.bf16.mxu0 %v2653_v3  ;;  %1107 = vmatprep.subr.bf16.mxu1 %v2656_v4  ;;  %v2701_v4 = vld [vmem:[#allocation4 + $0xb0] ss:$12 sps:$4 sm:$0xff]  }
  0x77   :  { %1067 = vmatpush2.bf16.msra.mxu0 %v2651_v5  ;;  %1108 = vmatpush2.bf16.msra.mxu1 %v2654_v6  ;;  %v2702_v5 = vld [vmem:[#allocation4 + $0x230] ss:$12 sps:$4 sm:$0xff]  }
  0x78   :  { %1068 = vmatprep.subr.bf16.mxu0 %v2659_v7  ;;  %1109 = vmatprep.subr.bf16.mxu1 %v2662_v8  ;;  %v2703_v7 = vld [vmem:[#allocation4 + $0x158] ss:$12 sps:$4 sm:$0xff]  }
  0x79   :  { %v2704_v8 = vld [vmem:[#allocation4 + $0x2d8] ss:$12 sps:$4 sm:$0xff]  }
  0x7b   :  { %1069 = vmatpush2.bf16.msra.mxu0 %v2657_v9  ;;  %1110 = vmatpush2.bf16.msra.mxu1 %v2660_v10  ;;  %v2705_v9 = vld [vmem:[#allocation4 + $0x98] ss:$12 sps:$4 sm:$0xff]  }
  0x7c   :  { %1070 = vmatprep.subr.bf16.mxu0 %v2665_v11  ;;  %1111 = vmatprep.subr.bf16.mxu1 %v2668_v12  ;;  %v2706_v10 = vld [vmem:[#allocation4 + $0x218] ss:$12 sps:$4 sm:$0xff]   ;;  %v2707_v11 = vld [vmem:[#allocation4 + $0x140] ss:$12 sps:$4 sm:$0xff]  }
  0x7d   :  { %v2708_v12 = vld [vmem:[#allocation4 + $0x2c0] ss:$12 sps:$4 sm:$0xff]  }
  0x7f   :  { %1071 = vmatpush2.bf16.msra.mxu0 %v2663_v13  ;;  %1112 = vmatpush2.bf16.msra.mxu1 %v2666_v14  ;;  %v2709_v13 = vld [vmem:[#allocation4 + $0x80] ss:$12 sps:$4 sm:$0xff]  }
  0x80   :  { %1072 = vmatprep.subr.bf16.mxu0 %v2671_v15  ;;  %1113 = vmatprep.subr.bf16.mxu1 %v2674_v16  ;;  %v2710_v14 = vld [vmem:[#allocation4 + $0x200] ss:$12 sps:$4 sm:$0xff]   ;;  %v2711_v15 = vld [vmem:[#allocation4 + $0x128] ss:$12 sps:$4 sm:$0xff]  }
  0x81   :  { %v2712_v16 = vld [vmem:[#allocation4 + $0x2a8] ss:$12 sps:$4 sm:$0xff]  }
  0x83   :  { %1073 = vmatpush2.bf16.msra.mxu0 %v2669_v17  ;;  %1114 = vmatpush2.bf16.msra.mxu1 %v2672_v18  ;;  %v2713_v17 = vld [vmem:[#allocation4 + $0x68] ss:$12 sps:$4 sm:$0xff]  }
  0x84   :  { %1074 = vmatprep.subr.bf16.mxu0 %v2677_v19  ;;  %1115 = vmatprep.subr.bf16.mxu1 %v2680_v20  ;;  %v2714_v18 = vld [vmem:[#allocation4 + $0x1e8] ss:$12 sps:$4 sm:$0xff]   ;;  %v2715_v19 = vld [vmem:[#allocation4 + $0x110] ss:$12 sps:$4 sm:$0xff]  }
  0x85   :  { %v2716_v20 = vld [vmem:[#allocation4 + $0x290] ss:$12 sps:$4 sm:$0xff]  }
  0x87   :  { %1075 = vmatpush2.bf16.msra.mxu0 %v2675_v21  ;;  %1116 = vmatpush2.bf16.msra.mxu1 %v2678_v22  ;;  %v2717_v21 = vld [vmem:[#allocation4 + $0x50] ss:$12 sps:$4 sm:$0xff]  }
  0x88   :  { %1076 = vmatprep.subr.bf16.mxu0 %v2683_v23  ;;  %1117 = vmatprep.subr.bf16.mxu1 %v2686_v24  ;;  %v2718_v22 = vld [vmem:[#allocation4 + $0x1d0] ss:$12 sps:$4 sm:$0xff]   ;;  %v2719_v23 = vld [vmem:[#allocation4 + $0xf8] ss:$12 sps:$4 sm:$0xff]  }
  0x89   :  { %v2720_v24 = vld [vmem:[#allocation4 + $0x278] ss:$12 sps:$4 sm:$0xff]  }
  0x8b   :  { %1077 = vmatpush2.bf16.msra.mxu0 %v2681_v25  ;;  %1118 = vmatpush2.bf16.msra.mxu1 %v2684_v26  ;;  %v2721_v25 = vld [vmem:[#allocation4 + $0x38] ss:$12 sps:$4 sm:$0xff]  }
  0x8c   :  { %1078 = vmatprep.subr.bf16.mxu0 %v2689_v27  ;;  %1119 = vmatprep.subr.bf16.mxu1 %v2692_v28  ;;  %v2722_v26 = vld [vmem:[#allocation4 + $0x1b8] ss:$12 sps:$4 sm:$0xff]   ;;  %v2723_v27 = vld [vmem:[#allocation4 + $0xe0] ss:$12 sps:$4 sm:$0xff]  }
  0x8d   :  { %v2724_v28 = vld [vmem:[#allocation4 + $0x260] ss:$12 sps:$4 sm:$0xff]  }
  0x8f   :  { %1079 = vmatpush2.bf16.msra.mxu0 %v2687_v29  ;;  %1120 = vmatpush2.bf16.msra.mxu1 %v2690_v30  ;;  %v2725_v29 = vld [vmem:[#allocation4 + $0x20] ss:$12 sps:$4 sm:$0xff]  }
  0x90   :  { %1080 = vmatprep.subr.bf16.mxu0 %v2695_v31  ;;  %1121 = vmatprep.subr.bf16.mxu1 %v2698_v32  ;;  %v2726_v30 = vld [vmem:[#allocation4 + $0x1a0] ss:$12 sps:$4 sm:$0xff]   ;;  %v2727_v31 = vld [vmem:[#allocation4 + $0xc8] ss:$12 sps:$4 sm:$0xff]  }
  0x91   :  { %v2728_v32 = vld [vmem:[#allocation4 + $0x248] ss:$12 sps:$4 sm:$0xff]  }
  0x93   :  { %1081 = vmatpush2.bf16.msra.mxu0 %v2693_v33  ;;  %1122 = vmatpush2.bf16.msra.mxu1 %v2696_v34  ;;  %v2729_v33 = vld [vmem:[#allocation4 + $0x8] ss:$12 sps:$4 sm:$0xff]  }
  0x94   :  { %2396 = vmatprep.subr.bf16.mxu0 %v2699_v35  ;;  %2418 = vmatprep.subr.bf16.mxu1 %v2700_v36  ;;  %v2730_v34 = vld [vmem:[#allocation4 + $0x188] ss:$12 sps:$4 sm:$0xff]   ;;  %v2733_v35 = vld [vmem:[#allocation6 + $0xac] ss:$12 sps:$4 sm:$0xff]  }
  0x95   :  { %v2731_v36 = vld [vmem:[#allocation6 + $0xa8] ss:$12 sps:$4 sm:$0xff]  }
 0x116   :  { %v337_v48 = vpop.f32.mrf.mxu0  ;;  %v378_v49 = vpop.f32.mrf.mxu1 }
 0x117   :  { %v338_v50 = vadd.f32 %v337_v48, %v126_v44  ;;  %v379_v51 = vadd.f32 %v378_v49, %v134_v45  ;;  %v2742_v44 = vld [vmem:[#allocation6 + $0x64] ss:$12 sps:$4 sm:$0xff]   ;;  %v2740_v45 = vld [vmem:[#allocation6 + $0x60] ss:$12 sps:$4 sm:$0xff]  }
 0x118   :  { %v339_v52 = vpop.f32.mrf.mxu0  ;;  %v380_v53 = vpop.f32.mrf.mxu1  ;;  %v2748_v48 = vld [vmem:[#allocation6 + $0x34] ss:$12 sps:$4 sm:$0xff]   ;;  %v2746_v49 = vld [vmem:[#allocation6 + $0x30] ss:$12 sps:$4 sm:$0xff]  }
 0x119   :  { %v387_v54 = vmax.f32 %v379_v51, 0.0  ;;  %v340_v55 = vadd.f32 %v339_v52, %v130_v46  ;;  %v381_v56 = vadd.f32 %v380_v53, %v138_v47  ;;  %v385_v57 = vmax.f32 %v338_v50, 0.0  ;;  %v2745_v46 = vld [vmem:[#allocation6 + $0x4c] ss:$12 sps:$4 sm:$0xff]   ;;  %v2743_v47 = vld [vmem:[#allocation6 + $0x48] ss:$12 sps:$4 sm:$0xff]  }
 0x11a   :  { %v341_v58 = vpop.f32.mrf.mxu0  ;;  %v382_v59 = vpop.f32.mrf.mxu1  ;;  %v2751_v50 = vld [vmem:[#allocation6 + $0x1c] ss:$12 sps:$4 sm:$0xff]   ;;  %v2754_v51 = vld [vmem:[#allocation6 + $0x4] ss:$12 sps:$4 sm:$0xff]   ;;  %v2752_v52 = vld [vmem:[#allocation6] ss:$12 sps:$4 sm:$0xff]  }
 0x11b   :  { %v386_v60 = vmax.f32 %v340_v55, 0.0  ;;  %v388_v61 = vmax.f32 %v381_v56, 0.0  ;;  %v3037_v62 = vpack.c.bf16 %v387_v54, %v387_v54  ;;  %v3039_v6 = vpack.c.bf16 %v385_v57, %v385_v57  ;;  %v2757_v53 = vld [vmem:[#allocation6 + $0x16c] ss:$12 sps:$4 sm:$0xff]   ;;  %v2755_v54 = vld [vmem:[#allocation6 + $0x168] ss:$12 sps:$4 sm:$0xff]  }
 0x11c   :  { %v342_v63 = vpop.f32.mrf.mxu0  ;;  %v383_v1 = vpop.f32.mrf.mxu1  ;;  %v2760_v55 = vld [vmem:[#allocation6 + $0x154] ss:$12 sps:$4 sm:$0xff]   ;;  %v2758_v56 = vld [vmem:[#allocation6 + $0x150] ss:$12 sps:$4 sm:$0xff]   ;;  %v2761_v58 = vld [vmem:[#allocation6 + $0x138] ss:$12 sps:$4 sm:$0xff]  }
 0x11d   :  { %v390_v2 = vpack.c.bf16 %v386_v60, %v386_v60  ;;  %v392_v3 = vpack.c.bf16 %v388_v61, %v388_v61  ;;  %v2763_v57 = vld [vmem:[#allocation6 + $0x13c] ss:$12 sps:$4 sm:$0xff]   ;;  %v2766_v59 = vld [vmem:[#allocation6 + $0x124] ss:$12 sps:$4 sm:$0xff]   ;;  %v2764_v60 = vld [vmem:[#allocation6 + $0x120] ss:$12 sps:$4 sm:$0xff]  }
 0x11e   :  { %v2769_v61 = vld [vmem:[#allocation6 + $0x10c] ss:$12 sps:$4 sm:$0xff]   ;;  %v2779_v63 = vld [vmem:[#allocation6 + $0x228] ss:$12 sps:$4 sm:$0xff]  }
 0x11f   :  { %1082 = vmatprep.mubr.bf16.mxu0 %v390_v2  ;;  %1123 = vmatprep.mubr.bf16.mxu1 %v392_v3  ;;  %v2767_v1 = vld [vmem:[#allocation6 + $0x108] ss:$12 sps:$4 sm:$0xff]  }
 0x120   :  { %1083 = vmatmul.mubr.bf16.vlgmr.msra.gmra.mxu0 %v3039_v6  ;;  %1124 = vmatmul.mubr.bf16.vlgmr.msra.gmra.mxu1 %v3037_v62 }
 0x121   :  { %2397 = vmatpush3.bf16.msra.mxu0 %v2701_v4  ;;  %2419 = vmatpush3.bf16.msra.mxu1 %v2702_v5  ;;  %v2772_v4 = vld [vmem:[#allocation6 + $0xf4] ss:$12 sps:$4 sm:$0xff]   ;;  %v2770_v5 = vld [vmem:[#allocation6 + $0xf0] ss:$12 sps:$4 sm:$0xff]  }
 0x122   :  { %1164 = vmatprep.mubr.bf16.mxu0 %v390_v2  ;;  %1204 = vmatprep.mubr.bf16.mxu1 %v392_v3  ;;  %v2783_v2 = vld [vmem:[#allocation6 + $0x210] ss:$12 sps:$4 sm:$0xff]   ;;  %v2785_v3 = vld [vmem:[#allocation6 + $0x214] ss:$12 sps:$4 sm:$0xff]  }
 0x123   :  { %2398 = vmatprep.subr.bf16.mxu0 %v2703_v7  ;;  %2420 = vmatprep.subr.bf16.mxu1 %v2704_v8  ;;  %v2789_v7 = vld [vmem:[#allocation6 + $0x1fc] ss:$12 sps:$4 sm:$0xff]  }
 0x124   :  { %v2775_v8 = vld [vmem:[#allocation6 + $0xdc] ss:$12 sps:$4 sm:$0xff]  }
 0x125   :  { %2399 = vmatpush3.bf16.msra.mxu0 %v2705_v9  ;;  %2421 = vmatpush3.bf16.msra.mxu1 %v2706_v10  ;;  %v2773_v9 = vld [vmem:[#allocation6 + $0xd8] ss:$12 sps:$4 sm:$0xff]   ;;  %v2791_v10 = vld [vmem:[#allocation6 + $0x1e0] ss:$12 sps:$4 sm:$0xff]  }
 0x126   :  { %2400 = vmatprep.subr.bf16.mxu0 %v2707_v11  ;;  %2422 = vmatprep.subr.bf16.mxu1 %v2708_v12  ;;  %v2793_v11 = vld [vmem:[#allocation6 + $0x1e4] ss:$12 sps:$4 sm:$0xff]  }
 0x127   :  { %v2778_v12 = vld [vmem:[#allocation6 + $0xc4] ss:$12 sps:$4 sm:$0xff]  }
 0x129   :  { %2401 = vmatpush3.bf16.msra.mxu0 %v2709_v13  ;;  %2423 = vmatpush3.bf16.msra.mxu1 %v2710_v14  ;;  %v2776_v13 = vld [vmem:[#allocation6 + $0xc0] ss:$12 sps:$4 sm:$0xff]   ;;  %v2795_v14 = vld [vmem:[#allocation6 + $0x1c8] ss:$12 sps:$4 sm:$0xff]  }
 0x12a   :  { %2402 = vmatprep.subr.bf16.mxu0 %v2711_v15  ;;  %2424 = vmatprep.subr.bf16.mxu1 %v2712_v16  ;;  %v2797_v15 = vld [vmem:[#allocation6 + $0x1cc] ss:$12 sps:$4 sm:$0xff]   ;;  %v2950_v16 = vmov 0.0  }
 0x12d   :  { %2403 = vmatpush3.bf16.msra.mxu0 %v2713_v17  ;;  %2425 = vmatpush3.bf16.msra.mxu1 %v2714_v18  ;;  %v2801_v17 = vld [vmem:[#allocation6 + $0x1b4] ss:$12 sps:$4 sm:$0xff]   ;;  %v2799_v18 = vld [vmem:[#allocation6 + $0x1b0] ss:$12 sps:$4 sm:$0xff]  }
 0x12e   :  { %2404 = vmatprep.subr.bf16.mxu0 %v2715_v19  ;;  %2426 = vmatprep.subr.bf16.mxu1 %v2716_v20  ;;  %v2805_v19 = vld [vmem:[#allocation6 + $0x19c] ss:$12 sps:$4 sm:$0xff]   ;;  %v2803_v20 = vld [vmem:[#allocation6 + $0x198] ss:$12 sps:$4 sm:$0xff]  }
 0x131   :  { %2405 = vmatpush3.bf16.msra.mxu0 %v2717_v21  ;;  %2427 = vmatpush3.bf16.msra.mxu1 %v2718_v22  ;;  %v2809_v21 = vld [vmem:[#allocation6 + $0x184] ss:$12 sps:$4 sm:$0xff]   ;;  %v2807_v22 = vld [vmem:[#allocation6 + $0x180] ss:$12 sps:$4 sm:$0xff]  }
 0x132   :  { %2406 = vmatprep.subr.bf16.mxu0 %v2719_v23  ;;  %2428 = vmatprep.subr.bf16.mxu1 %v2720_v24  ;;  %v2811_v23 = vld [vmem:[#allocation6 + $0x170] ss:$12 sps:$4 sm:$0xff]   ;;  %v521_v24 = vld [vmem:[%s3092_s4] sm:$0x7] }
 0x135   :  { %2407 = vmatpush3.bf16.msra.mxu0 %v2721_v25  ;;  %2429 = vmatpush3.bf16.msra.mxu1 %v2722_v26  ;;  %v526_v25 = vrot.slane %v521_v24, %v3025_v39  ;;  %v530_v26 = vrot.slane %v521_v24, %v3032_v42 }
 0x136   :  { %2408 = vmatprep.subr.bf16.mxu0 %v2723_v27  ;;  %2430 = vmatprep.subr.bf16.mxu1 %v2724_v28 }
 0x139   :  { %2409 = vmatpush3.bf16.msra.mxu0 %v2725_v29  ;;  %2431 = vmatpush3.bf16.msra.mxu1 %v2726_v30 }
 0x13a   :  { %2410 = vmatprep.subr.bf16.mxu0 %v2727_v31  ;;  %2432 = vmatprep.subr.bf16.mxu1 %v2728_v32 }
 0x13d   :  { %2411 = vmatpush3.bf16.msra.mxu0 %v2729_v33  ;;  %2433 = vmatpush3.bf16.msra.mxu1 %v2730_v34 }
 0x13e   :  { %1715 = vmatprep.subr.bf16.mxu0 %v2733_v35 }
 0x140   :  { %1165 = vmatmul.mubr.bf16.vlgmr.msra.gmra.mxu0 %v3039_v6  ;;  %1205 = vmatmul.mubr.bf16.vlgmr.msra.gmra.mxu1 %v3037_v62  ;;  %v2781_v62 = vld [vmem:[#allocation6 + $0x22c] ss:$12 sps:$4 sm:$0xff]  }
 0x141   :  { %1716 = vmatpush1.bf16.msra.mxu0 %v2731_v36  ;;  %1788 = vmatprep.mubr.bf16.mxu1 %v2949_v0  ;;  %v2749_v0 = vld [vmem:[#allocation6 + $0x18] ss:$12 sps:$4 sm:$0xff]  }
 0x142   :  { %1717 = vmatprep.subr.bf16.mxu0 %v2736_v37  ;;  %1756 = vmatprep.subr.bf16.mxu1 %v2781_v62  ;;  %v2787_v6 = vld [vmem:[#allocation6 + $0x1f8] ss:$12 sps:$4 sm:$0xff]   ;;  %v2810_v62 = vld [vmem:[#allocation6 + $0x188] ss:$12 sps:$4 sm:$0xff]  }
 0x143   :  { %1757 = vmatpush1.bf16.msra.mxu1 %v2779_v63 }
 0x144   :  { %1758 = vmatprep.subr.bf16.mxu1 %v2785_v3 }
 0x145   :  { %1718 = vmatpush1.bf16.msra.mxu0 %v2734_v38 }
 0x146   :  { %1719 = vmatprep.subr.bf16.mxu0 %v2739_v41 }
 0x147   :  { %1759 = vmatpush1.bf16.msra.mxu1 %v2783_v2 }
 0x148   :  { %1760 = vmatprep.subr.bf16.mxu1 %v2789_v7  ;;  %v2814_v7 = vld [vmem:[#allocation6 + $0x98] ss:$12 sps:$4 sm:$0xff]  }
 0x149   :  { %1720 = vmatpush1.bf16.msra.mxu0 %v2737_v43 }
 0x14a   :  { %1721 = vmatprep.subr.bf16.mxu0 %v2742_v44 }
 0x14b   :  { %1761 = vmatpush1.bf16.msra.mxu1 %v2787_v6  ;;  %v2813_v6 = vld [vmem:[#allocation6 + $0x158] ss:$12 sps:$4 sm:$0xff]  }
 0x14c   :  { %1762 = vmatprep.subr.bf16.mxu1 %v2793_v11  ;;  %v2818_v11 = vld [vmem:[#allocation6 + $0x68] ss:$12 sps:$4 sm:$0xff]  }
 0x14d   :  { %1722 = vmatpush1.bf16.msra.mxu0 %v2740_v45  ;;  %v2782_v45 = vld [vmem:[#allocation6 + $0x230] ss:$12 sps:$4 sm:$0xff]  }
 0x14e   :  { %1723 = vmatprep.subr.bf16.mxu0 %v2745_v46 }
 0x14f   :  { %1763 = vmatpush1.bf16.msra.mxu1 %v2791_v10  ;;  %v2817_v10 = vld [vmem:[#allocation6 + $0x128] ss:$12 sps:$4 sm:$0xff]  }
 0x150   :  { %1764 = vmatprep.subr.bf16.mxu1 %v2797_v15  ;;  %v2822_v15 = vld [vmem:[#allocation6 + $0x38] ss:$12 sps:$4 sm:$0xff]  }
 0x151   :  { %1724 = vmatpush1.bf16.msra.mxu0 %v2743_v47  ;;  %v2786_v47 = vld [vmem:[#allocation6 + $0x218] ss:$12 sps:$4 sm:$0xff]  }
 0x152   :  { %1725 = vmatprep.subr.bf16.mxu0 %v2748_v48  ;;  %v2790_v48 = vld [vmem:[#allocation6 + $0x200] ss:$12 sps:$4 sm:$0xff]  }
 0x153   :  { %1765 = vmatpush1.bf16.msra.mxu1 %v2795_v14  ;;  %v2821_v14 = vld [vmem:[#allocation6 + $0xf8] ss:$12 sps:$4 sm:$0xff]  }
 0x154   :  { %1766 = vmatprep.subr.bf16.mxu1 %v2801_v17  ;;  %v2823_v17 = vld [vmem:[#allocation6 + $0xe0] ss:$12 sps:$4 sm:$0xff]  }
 0x155   :  { %1726 = vmatpush1.bf16.msra.mxu0 %v2746_v49  ;;  %v2794_v49 = vld [vmem:[#allocation6 + $0x1e8] ss:$12 sps:$4 sm:$0xff]  }
 0x156   :  { %1727 = vmatprep.subr.bf16.mxu0 %v2751_v50  ;;  %v2798_v50 = vld [vmem:[#allocation6 + $0x1d0] ss:$12 sps:$4 sm:$0xff]  }
 0x157   :  { %1767 = vmatpush1.bf16.msra.mxu1 %v2799_v18  ;;  %v2824_v18 = vld [vmem:[#allocation6 + $0x20] ss:$12 sps:$4 sm:$0xff]  }
 0x158   :  { %1768 = vmatprep.subr.bf16.mxu1 %v2805_v19  ;;  %v2825_v19 = vld [vmem:[#allocation6 + $0xc8] ss:$12 sps:$4 sm:$0xff]  }
 0x159   :  { %1728 = vmatpush1.bf16.msra.mxu0 %v2749_v0  ;;  %v2802_v0 = vld [vmem:[#allocation6 + $0x1b8] ss:$12 sps:$4 sm:$0xff]  }
 0x15a   :  { %1729 = vmatprep.subr.bf16.mxu0 %v2754_v51 }
 0x15b   :  { %1769 = vmatpush1.bf16.msra.mxu1 %v2803_v20  ;;  %v2826_v20 = vld [vmem:[#allocation6 + $0x8] ss:$12 sps:$4 sm:$0xff]  }
 0x15c   :  { %1770 = vmatprep.subr.bf16.mxu1 %v2809_v21  ;;  %v2827_v21 = vld [vmem:[#allocation7 + $0x78] sm:$0xff]  }
 0x15d   :  { %1730 = vmatpush1.bf16.msra.mxu0 %v2752_v52 }
 0x15e   :  { %1731 = vmatprep.subr.bf16.mxu0 %v2757_v53  ;;  %v534_v53 = vrot.slane %v521_v24, %v3027_v40  ;;  %v2830_v24 = vld [vmem:[#allocation7 + $0x30] sm:$0xff]  }
 0x15f   :  { %1771 = vmatpush1.bf16.msra.mxu1 %v2807_v22  ;;  %v2828_v22 = vld [vmem:[#allocation7 + $0x38] sm:$0xff]  }
 0x160   :  { %2440 = vmatprep.subr.bf16.mxu1 %v2811_v23  ;;  %v2829_v23 = vld [vmem:[#allocation7 + $0x70] sm:$0xff]  }
 0x161   :  { %1732 = vmatpush2.bf16.msra.mxu0 %v2755_v54  ;;  %v2806_v54 = vld [vmem:[#allocation6 + $0x1a0] ss:$12 sps:$4 sm:$0xff]  }
 0x162   :  { %1733 = vmatprep.subr.bf16.mxu0 %v2760_v55 }
 0x165   :  { %1734 = vmatpush2.bf16.msra.mxu0 %v2758_v56 }
 0x166   :  { %1735 = vmatprep.subr.bf16.mxu0 %v2763_v57 }
 0x169   :  { %1736 = vmatpush2.bf16.msra.mxu0 %v2761_v58 }
 0x16a   :  { %1737 = vmatprep.subr.bf16.mxu0 %v2766_v59 }
 0x16d   :  { %1738 = vmatpush2.bf16.msra.mxu0 %v2764_v60 }
 0x16e   :  { %1739 = vmatprep.subr.bf16.mxu0 %v2769_v61 }
 0x171   :  { %1740 = vmatpush2.bf16.msra.mxu0 %v2767_v1 }
 0x172   :  { %1741 = vmatprep.subr.bf16.mxu0 %v2772_v4  ;;  %v2812_v4 = vld [vmem:[#allocation6 + $0xb0] ss:$12 sps:$4 sm:$0xff]  }
 0x175   :  { %1742 = vmatpush2.bf16.msra.mxu0 %v2770_v5 }
 0x176   :  { %1743 = vmatprep.subr.bf16.mxu0 %v2775_v8  ;;  %v2815_v8 = vld [vmem:[#allocation6 + $0x140] ss:$12 sps:$4 sm:$0xff]  }
 0x179   :  { %1744 = vmatpush2.bf16.msra.mxu0 %v2773_v9  ;;  %v2816_v9 = vld [vmem:[#allocation6 + $0x80] ss:$12 sps:$4 sm:$0xff]  }
 0x17a   :  { %1745 = vmatprep.subr.bf16.mxu0 %v2778_v12  ;;  %v2819_v12 = vld [vmem:[#allocation6 + $0x110] ss:$12 sps:$4 sm:$0xff]  }
 0x17d   :  { %1746 = vmatpush2.bf16.msra.mxu0 %v2776_v13  ;;  %v2820_v13 = vld [vmem:[#allocation6 + $0x50] ss:$12 sps:$4 sm:$0xff]  }
 0x17e   :  { %2502 = vmatprep.subr.bf16.mxu0 %v2950_v16 }
 0x1e0   :  { %v1084_v27 = vpop.f32.mrf.mxu0  ;;  %v1125_v28 = vpop.f32.mrf.mxu1 }
 0x1e1   :  { %v1085_v29 = vadd.f32 %v1084_v27, %v526_v25  ;;  %v2831_v25 = vld [vmem:[#allocation7 + $0x68] sm:$0xff]   ;;  %v2833_v27 = vld [vmem:[#allocation7 + $0x60] sm:$0xff]  }
 0x1e2   :  { %v1086_v30 = vpop.f32.mrf.mxu0  ;;  %v1127_v31 = vpop.f32.mrf.mxu1 }
 0x1e3   :  { %v1126_v32 = vadd.f32 %v1125_v28, %v1085_v29  ;;  %v1087_v33 = vadd.f32 %v1086_v30, %v530_v26  ;;  %v2832_v26 = vld [vmem:[#allocation7 + $0x28] sm:$0xff]   ;;  %v2834_v28 = vld [vmem:[#allocation7 + $0x20] sm:$0xff]   ;;  %v2835_v29 = vld [vmem:[#allocation7 + $0x58] sm:$0xff]  }
 0x1e4   :  { %v1088_v34 = vpop.f32.mrf.mxu0  ;;  %v1129_v35 = vpop.f32.mrf.mxu1  ;;  %v2836_v30 = vld [vmem:[#allocation7 + $0x18] sm:$0xff]  }
 0x1e5   :  { %v1128_v36 = vadd.f32 %v1127_v31, %v1087_v33  ;;  %v1212_v37 = vmax.f32 %v1126_v32, 0.0  ;;  %v2837_v31 = vld [vmem:[#allocation7 + $0x50] sm:$0xff]   ;;  %v2839_v33 = vld [vmem:[#allocation7 + $0x48] sm:$0xff]   ;;  %v2841_v35 = vld [vmem:[#allocation7 + $0x40] sm:$0xff]  }
 0x1e6   :  { %v1089_v38 = vpop.f32.mrf.mxu0  ;;  %v1130_v41 = vpop.f32.mrf.mxu1  ;;  %v2838_v32 = vld [vmem:[#allocation7 + $0x10] sm:$0xff]   ;;  %v2840_v34 = vld [vmem:[#allocation7 + $0x8] sm:$0xff]  }
 0x1e7   :  { %v1213_v43 = vmax.f32 %v1128_v36, 0.0  ;;  %v3052_v46 = vpack.c.bf16 %v1212_v37, %v1212_v37  ;;  %v2842_v36 = vld [vmem:[#allocation7] sm:$0xff]   ;;  %v2843_v37 = vld [vmem:[#allocation7 + $0xb8] sm:$0xff]   ;;  %v2844_v38 = vld [vmem:[#allocation7 + $0xb0] sm:$0xff]  }
 0x1e8   :  { %v2845_v41 = vld [vmem:[#allocation7 + $0xa8] sm:$0xff]  }
 0x1e9   :  { %v1216_v44 = vpack.c.bf16 %v1213_v43, %v1213_v43  ;;  %v2846_v43 = vld [vmem:[#allocation7 + $0xa0] sm:$0xff]  }
 0x1eb   :  { %1747 = vmatprep.mubr.bf16.mxu0 %v1216_v44 }
 0x1ec   :  { %1748 = vmatmul.mubr.bf16.vlgmr.msra.gmra.mxu0 %v3052_v46 }
 0x1ed   :  { %2503 = vmatpush3.bf16.msra.mxu0 %v2782_v45  ;;  %2518 = vmatprep.mubr.msk.bf16.mxu0 %vm2951_vm0, %v2950_v16  ;;  %v2848_v45 = vld [vmem:[#allocation7 + $0x90] sm:$0xff]  }
 0x1ee   :  { %2504 = vmatprep.subr.bf16.mxu0 %v2950_v16 }
 0x1f1   :  { %2505 = vmatpush3.bf16.msra.mxu0 %v2786_v47  ;;  %v2850_v47 = vld [vmem:[#allocation7 + $0x80] sm:$0xff]  }
 0x1f2   :  { %2506 = vmatprep.subr.bf16.mxu0 %v2950_v16 }
 0x1f5   :  { %2507 = vmatpush3.bf16.msra.mxu0 %v2790_v48 }
 0x1f6   :  { %2508 = vmatprep.subr.bf16.mxu0 %v2950_v16 }
 0x1f9   :  { %2509 = vmatpush3.bf16.msra.mxu0 %v2794_v49 }
 0x1fa   :  { %2510 = vmatprep.subr.bf16.mxu0 %v2950_v16 }
 0x1fd   :  { %2511 = vmatpush3.bf16.msra.mxu0 %v2798_v50 }
 0x1fe   :  { %2512 = vmatprep.subr.bf16.mxu0 %v2950_v16 }
 0x200   :  { %v2412_v51 = vpop.f32.mrf.mxu0  ;;  %v2434_v52 = vpop.f32.mrf.mxu1 }
 0x201   :  { %2513 = vmatpush3.bf16.msra.mxu0 %v2802_v0 }
 0x202   :  { %v2413_v55 = vpop.f32.mrf.mxu0  ;;  %v2435_v56 = vpop.f32.mrf.mxu1  ;;  %2514 = vmatprep.subr.bf16.mxu0 %v2950_v16 }
 0x203   :  { %v2414_v57 = vadd.f32 %v2413_v55, %v2412_v51  ;;  %v2436_v61 = vadd.f32 %v2435_v56, %v2434_v52  ;;  %v1314_v51 = vld [vmem:[%s3094_s6] sm:$0x7] }
 0x204   :  { %v2415_v58 = vpop.f32.mrf.mxu0  ;;  %v2437_v59 = vpop.f32.mrf.mxu1  ;;  %v1319_v52 = vrot.slane %v1314_v51, %v3025_v39 }
 0x205   :  { %v1167_v60 = vadd.f32 %v2414_v57, %v534_v53  ;;  %2515 = vmatpush3.bf16.msra.mxu0 %v2806_v54  ;;  %v1323_v53 = vrot.slane %v1314_v51, %v3032_v42  ;;  %v1327_v42 = vrot.slane %v1314_v51, %v3027_v40 }
 0x206   :  { %v2416_v63 = vpop.f32.mrf.mxu0  ;;  %v2438_v1 = vpop.f32.mrf.mxu1  ;;  %2516 = vmatprep.subr.bf16.mxu0 %v2950_v16 }
 0x207   :  { %v1207_v2 = vadd.f32 %v2436_v61, %v1167_v60 }
 0x209   :  { %v1214_v3 = vmax.f32 %v1207_v2, 0.0  ;;  %2517 = vmatpush3.bf16.msra.mxu0 %v2810_v62 }
 0x20a   :  { %2522 = vmatprep.subr.bf16.mxu0 %v2950_v16 }
 0x20b   :  { %v1217_v5 = vpack.c.bf16 %v1214_v3, %v1214_v3 }
 0x20d   :  { %1789 = vmatmul.mubr.bf16.vlgmr.msra.gmra.mxu1 %v1217_v5  ;;  %2519 = vmatmul.mubr.bf16.vlgmr.msra.gmra.mxu0 %v1217_v5 }
 0x20e   :  { %2441 = vmatpush3.bf16.msra.mxu1 %v2812_v4  ;;  %1829 = vmatprep.mubr.bf16.mxu1 %v1216_v44  ;;  %v2847_v44 = vld [vmem:[#allocation7 + $0x98] sm:$0xff]  }
 0x20f   :  { %2442 = vmatprep.subr.bf16.mxu1 %v2813_v6  ;;  %2538 = vmatprep.mubr.msk.bf16.mxu0 %vm2951_vm0, %v2950_v16 }
 0x210   :  { %2523 = vmatpush3.bf16.msra.mxu0 %v2843_v37 }
 0x211   :  { %2524 = vmatprep.subr.bf16.mxu0 %v2950_v16 }
 0x212   :  { %2443 = vmatpush3.bf16.msra.mxu1 %v2814_v7 }
 0x213   :  { %2444 = vmatprep.subr.bf16.mxu1 %v2815_v8 }
 0x214   :  { %2525 = vmatpush3.bf16.msra.mxu0 %v2844_v38 }
 0x215   :  { %2526 = vmatprep.subr.bf16.mxu0 %v2950_v16 }
 0x216   :  { %2445 = vmatpush3.bf16.msra.mxu1 %v2816_v9 }
 0x217   :  { %2446 = vmatprep.subr.bf16.mxu1 %v2817_v10 }
 0x218   :  { %2527 = vmatpush3.bf16.msra.mxu0 %v2845_v41 }
 0x219   :  { %2528 = vmatprep.subr.bf16.mxu0 %v2950_v16 }
 0x21a   :  { %2447 = vmatpush3.bf16.msra.mxu1 %v2818_v11 }
 0x21b   :  { %2448 = vmatprep.subr.bf16.mxu1 %v2819_v12 }
 0x21c   :  { %2529 = vmatpush3.bf16.msra.mxu0 %v2846_v43 }
 0x21d   :  { %2530 = vmatprep.subr.bf16.mxu0 %v2950_v16 }
 0x21e   :  { %2449 = vmatpush3.bf16.msra.mxu1 %v2820_v13 }
 0x21f   :  { %2450 = vmatprep.subr.bf16.mxu1 %v2821_v14 }
 0x220   :  { %2531 = vmatpush3.bf16.msra.mxu0 %v2847_v44 }
 0x221   :  { %2532 = vmatprep.subr.bf16.mxu0 %v2950_v16 }
 0x222   :  { %2451 = vmatpush3.bf16.msra.mxu1 %v2822_v15 }
 0x223   :  { %2452 = vmatprep.subr.bf16.mxu1 %v2823_v17 }
 0x224   :  { %2533 = vmatpush3.bf16.msra.mxu0 %v2848_v45 }
 0x225   :  { %2534 = vmatprep.subr.bf16.mxu0 %v2950_v16 }
 0x226   :  { %2453 = vmatpush3.bf16.msra.mxu1 %v2824_v18 }
 0x227   :  { %2454 = vmatprep.subr.bf16.mxu1 %v2825_v19 }
 0x22a   :  { %2455 = vmatpush3.bf16.msra.mxu1 %v2826_v20  ;;  %v2371_v20 = vld [vmem:[%s3096_s8] ss:$0 sm:$0xff] }
 0x22b   :  { %2471 = vmatprep.subr.bf16.mxu1 %v2827_v21 }
 0x22d   :  { %1830 = vmatmul.mubr.bf16.vlgmr.msra.gmra.mxu1 %v3052_v46  ;;  %v2849_v46 = vld [vmem:[#allocation7 + $0x88] sm:$0xff]  }
 0x22e   :  { %2472 = vmatpush3.bf16.msra.mxu1 %v2828_v22  ;;  %2535 = vmatpush3.bf16.msra.mxu0 %v2849_v46 }
 0x22f   :  { %2473 = vmatprep.subr.bf16.mxu1 %v2829_v23  ;;  %2536 = vmatprep.subr.bf16.mxu0 %v2950_v16 }
 0x232   :  { %2474 = vmatpush3.bf16.msra.mxu1 %v2830_v24  ;;  %2537 = vmatpush3.bf16.msra.mxu0 %v2850_v47 }
 0x233   :  { %2475 = vmatprep.subr.bf16.mxu1 %v2831_v25 }
 0x236   :  { %2476 = vmatpush3.bf16.msra.mxu1 %v2832_v26 }
 0x237   :  { %2477 = vmatprep.subr.bf16.mxu1 %v2833_v27 }
 0x23a   :  { %2478 = vmatpush3.bf16.msra.mxu1 %v2834_v28 }
 0x23b   :  { %2479 = vmatprep.subr.bf16.mxu1 %v2835_v29 }
 0x23e   :  { %2480 = vmatpush3.bf16.msra.mxu1 %v2836_v30 }
 0x23f   :  { %2481 = vmatprep.subr.bf16.mxu1 %v2837_v31 }
 0x242   :  { %2482 = vmatpush3.bf16.msra.mxu1 %v2838_v32 }
 0x243   :  { %2483 = vmatprep.subr.bf16.mxu1 %v2839_v33 }
 0x246   :  { %2484 = vmatpush3.bf16.msra.mxu1 %v2840_v34 }
 0x247   :  { %2485 = vmatprep.subr.bf16.mxu1 %v2841_v35 }
 0x24a   :  { %2486 = vmatpush3.bf16.msra.mxu1 %v2842_v36 }
 0x2ac   :  { %v1749_v48 = vpop.f32.mrf.mxu0 }
 0x2ad   :  { %v1750_v54 = vadd.f32 %v1749_v48, %v1319_v52 }
 0x2ae   :  { %v1751_v49 = vpop.f32.mrf.mxu0 }
 0x2af   :  { %v1752_v57 = vadd.f32 %v1751_v49, %v1323_v53 }
 0x2b0   :  { %v1753_v50 = vpop.f32.mrf.mxu0 }
 0x2b2   :  { %v1754_v0 = vpop.f32.mrf.mxu0 }
 0x2cd   :  { %v1790_v55 = vpop.f32.mrf.mxu1  ;;  %v1871_v56 = vpop.f32.mrf.mxu0 }
 0x2ce   :  { %v1791_v58 = vadd.f32 %v1790_v55, %v1750_v54 }
 0x2cf   :  { %v1792_v16 = vpop.f32.mrf.mxu1  ;;  %v2520_v59 = vpop.f32.mrf.mxu0 }
 0x2d0   :  { %v1793_v60 = vadd.f32 %v1792_v16, %v1752_v57  ;;  %v1877_v61 = vmax.f32 %v1791_v58, 0.0 }
 0x2d1   :  { %v1794_v62 = vpop.f32.mrf.mxu1  ;;  %v1874_v63 = vpop.f32.mrf.mxu0 }
 0x2d2   :  { %v1878_v1 = vmax.f32 %v1793_v60, 0.0  ;;  %v1880_v5 = vpack.c.bf16 %v1877_v61, %v1877_v61 }
 0x2d3   :  { %v1795_v2 = vpop.f32.mrf.mxu1  ;;  %v2521_v3 = vpop.f32.mrf.mxu0 }
 0x2d4   :  { %v1881_v4 = vpack.c.bf16 %v1878_v1, %v1878_v1 }
 0x2d6   :  { %2114 = vmatprep.mubr.bf16.mxu1 %v1881_v4 }
 0x2d7   :  { %2115 = vmatmul.mubr.bf16.vlgmr.msra.gmra.mxu1 %v1880_v5 }
 0x2ed   :  { %v2456_v39 = vpop.f32.mrf.mxu1 }
 0x2ef   :  { %v2457_v6 = vpop.f32.mrf.mxu1 }
 0x2f0   :  { %v2458_v7 = vadd.f32 %v2457_v6, %v2456_v39 }
 0x2f1   :  { %v2459_v8 = vpop.f32.mrf.mxu1 }
 0x2f2   :  { %v1832_v9 = vadd.f32 %v2458_v7, %v1327_v42 }
 0x2f3   :  { %v2460_v10 = vpop.f32.mrf.mxu1 }
 0x2f4   :  { %v1872_v11 = vadd.f32 %v1871_v56, %v1832_v9 }
 0x2f6   :  { %v1879_v12 = vmax.f32 %v1872_v11, 0.0 }
 0x2f8   :  { %v1882_v13 = vpack.c.bf16 %v1879_v12, %v1879_v12 }
 0x2fa   :  { %2539 = vmatmul.mubr.bf16.vlgmr.msra.gmra.mxu0 %v1882_v13 }
 0x397   :  { %v2487_v14 = vpop.f32.mrf.mxu1 }
 0x399   :  { %v2488_v15 = vpop.f32.mrf.mxu1 }
 0x39a   :  { %v2489_v19 = vadd.f32 %v2488_v15, %v2487_v14 }
 0x39b   :  { %v2490_v17 = vpop.f32.mrf.mxu1 }
 0x39c   :  { %v2117_v21 = vadd.f32 %v2489_v19, %v2371_v20 }
 0x39d   :  { %v2491_v18 = vpop.f32.mrf.mxu1 }
 0x3ba   :  { %v2156_v40 = vpop.f32.mrf.mxu0 }
 0x3bb   :  { %v2157_v22 = vadd.f32 %v2156_v40, %v2117_v21 }
 0x3bc   :  { %v2540_v23 = vpop.f32.mrf.mxu0 }
 0x3bd   :  { %2851 = vtanh.f32 %v2157_v22 }
 0x3be   :  { %v2159_v24 = vpop.f32.mrf.mxu0 }
 0x3c0   :  { %v2541_v25 = vpop.f32.mrf.mxu0 }
 0x3ca   :  { %v2852_v26 = vpop.eup %2851 }
 0x3cb   :  { %2163 = vst [vmem:[%s3097_s9] sm:$0xff] %v2852_v26 }
 0x3cc   :  { %2168 = vsyncpa [#allocation3], 1 }
 0x3cd   :  { %2169 = vsyncpa [#allocation5], 1 }
 0x3ce   :  { %2170 = vsyncpa [#allocation8], 1 }

</bundles_post_ra>
